<compile_context>
chip_gen: v6e
topology: v6e:2x2x1
jax: 0.10.0
libtpu: 0.0.40
codegen_flags: <defaults>
</compile_context>

<pallas_src>
import jax
import jax.numpy as jnp
from jax.experimental import pallas as pl
from jax.experimental.pallas import tpu as pltpu


_SMALL_C = 8                            # C <= this -> dense VPU broadcast-FMA path
_MAX_BATCH_BLOCK = 8                    # cap on batch elements folded into one tile
_TARGET_TILE_BYTES = 3 * 1024 * 1024    # ~3 MiB of input per tile (HBM-roofline sweet spot)


def _glu_kernel_vpu(w_ref, b_ref, x_ref, o_ref):
    """Small-C path.

    w_ref: (C, C) f32 VMEM; b_ref: (C, 1) f32 VMEM; x_ref/o_ref: (nb, C, T) VMEM.
    lin accumulated densely on the (C, T) tile with C rank-1 broadcast-FMAs (the
    (1, T) -> (C, T) sublane broadcast is folded into the FMA operand), then a single
    sigmoid epilogue and a single unmasked lane-dense store per batch slab.
    """
    nb, C, _ = x_ref.shape
    w = w_ref[...]                                   # (C, C) f32, loaded once
    b = b_ref[...]                                   # (C, 1) f32
    for i in range(nb):                              # nb is small; unrolled at trace time
        x = x_ref[i].astype(jnp.float32)             # (C, T) dense tile
        lin = b                                      # (C, 1), broadcasts to (C, T)
        for c in range(C):                           # C rank-1 updates on the dense tile
            lin = lin + w[:, c:c + 1] * x[c:c + 1, :]
        gate = pl.reciprocal(1.0 + jnp.exp(-lin), approx=False)   # EUP exp + exact recip
        o_ref[i] = (lin * gate).astype(o_ref.dtype)


def _glu_kernel_mxu(w_ref, b_ref, x_ref, o_ref):
    """MXU path.

    w_ref: (tco, C) VMEM (f32 or bf16); b_ref: (tco, 1) f32 VMEM;
    x_ref: (nb, C, T) VMEM (same dtype as w); o_ref: (nb, tco, T) VMEM.
    """
    nb = x_ref.shape[0]
    w = w_ref[...]
    b = b_ref[...]                                   # (tco, 1) f32
    for i in range(nb):                              # unrolled at trace time
        lin = jnp.dot(w, x_ref[i], preferred_element_type=jnp.float32) + b
        gate = pl.reciprocal(1.0 + jnp.exp(-lin), approx=False)
        o_ref[i] = (lin * gate).astype(o_ref.dtype)


def _vmem_budget_bytes():
    """Generation-aware VMEM budget (~3/4 of physical), clamped to a safe range."""
    cap = None
    try:
        cap = getattr(pltpu.get_tpu_info(), "vmem_capacity_bytes", None)
    except Exception:
        cap = None
    if not cap:
        cap = 64 * 1024 * 1024          # v7x-sized fallback (smallest current-gen VMEM)
    return int(min(max(cap * 3 // 4, 32 * 1024 * 1024), 112 * 1024 * 1024))


def _largest_divisor_leq(n, cap):
    cap = max(1, min(n, cap))
    for d in range(cap, 0, -1):
        if n % d == 0:
            return d
    return 1


def glu_forward(x_nchw, weight, bias):
    """x_nchw: (N, C, H, W); weight: (C, C) in PyTorch (out, in) convention; bias: (C,)."""
    N, C, H, W = x_nchw.shape
    HW = H * W
    x3 = x_nchw.reshape(N, C, HW)        # pure view of contiguous NCHW memory

    small_c = C <= _SMALL_C
    x_bytes = jnp.dtype(x_nchw.dtype).itemsize
    out_bytes = x_bytes

    # bf16 activations take the full-rate bf16 MXU path (weight cast to bf16, no upcast
    # of x); the VPU path and f32 activations keep an f32 weight.  Epilogue is f32 always.
    if (not small_c) and x_nchw.dtype == jnp.bfloat16:
        w_dtype = jnp.bfloat16
    else:
        w_dtype = jnp.float32
    w_bytes = jnp.dtype(w_dtype).itemsize

    budget = _vmem_budget_bytes()

    # ---- Weight residency: keep whole when cheap, else stream output-channel row blocks.
    w_full = C * C * w_bytes
    if small_c or w_full <= budget // 4:
        tco = C
        w_resident = 2 * w_full          # grid-invariant (fetched once); count 2 bufs
    else:
        tco = max(8, min(C, ((budget // 8) // (C * w_bytes)) // 8 * 8))
        w_resident = 2 * tco * C * w_bytes
    # TODO(synk): for C_in so large that a single (C_in, 128) activation column exceeds
    # the budget, add a K (input-channel) grid axis with a pl.when-initialized f32
    # accumulator; output-channel streaming covers all realistic C without it.

    # ---- Lane/batch tile sizing by bytes: 2x in + 2x out buffers + f32 lin/gate/product.
    col_cost = 2 * C * x_bytes + 2 * tco * out_bytes + 3 * tco * 4
    target_cols = max(128, _TARGET_TILE_BYTES // max(1, C * x_bytes))
    max_cols = max(128, (budget - w_resident) // col_cost)
    cols = min(target_cols, max_cols)

    if HW <= cols:
        thw = HW                                       # full spatial extent per tile
        nb_cap = min(_MAX_BATCH_BLOCK, max(1, cols // max(1, HW)))
    else:
        thw = max(128, (cols // 128) * 128)            # multiple of 128 lanes
        nb_cap = 1
    nb = _largest_divisor_leq(N, nb_cap)               # divisor of N: no ragged batch block

    n_b = N // nb
    n_hw = pl.cdiv(HW, thw)
    n_co = pl.cdiv(C, tco)

    # Give v7x's two TensorCores something to split when the whole problem fits one tile.
    if n_b * n_hw * n_co == 1:
        if N > 1:
            nb = _largest_divisor_leq(N, max(1, N // 2))
            n_b = N // nb
        elif HW >= 256:
            half = max(128, ((pl.cdiv(HW, 2) + 127) // 128) * 128)
            if half < HW:
                thw = half
                n_hw = pl.cdiv(HW, thw)

    w_in = weight.astype(w_dtype)                      # (C, C)
    b_in = bias.astype(jnp.float32).reshape(C, 1)      # (C, 1), f32 epilogue add

    w_spec = pl.BlockSpec((tco, C), lambda b, h, o: (o, 0))
    b_spec = pl.BlockSpec((tco, 1), lambda b, h, o: (o, 0))
    x_spec = pl.BlockSpec((nb, C, thw), lambda b, h, o: (b, 0, h))
    out_spec = pl.BlockSpec((nb, tco, thw), lambda b, h, o: (b, o, h))

    kernel = _glu_kernel_vpu if small_c else _glu_kernel_mxu

    out3 = pl.pallas_call(
        kernel,
        out_shape=jax.ShapeDtypeStruct((N, C, HW), x_nchw.dtype),
        grid_spec=pltpu.PrefetchScalarGridSpec(
            num_scalar_prefetch=0,
            grid=(n_b, n_hw, n_co),
            in_specs=[w_spec, b_spec, x_spec],
            out_specs=out_spec,
        ),
        compiler_params=pltpu.CompilerParams(
            # All axes independent (no accumulation): megacore can shard any of them.
            dimension_semantics=("parallel", "parallel", "parallel"),
            vmem_limit_bytes=budget,
        ),
    )(w_in, b_in, x3)

    return out3.reshape(N, C, H, W)


def glu_reference(x_nchw, weight, bias):
    lin = jnp.einsum("nchw,oc->nohw", x_nchw, weight) + bias[None, :, None, None]
    return lin * jax.nn.sigmoid(lin)


if __name__ == "__main__":
    key = jax.random.PRNGKey(0)
    kx, kw, kb, kx2, kw2, kb2 = jax.random.split(key, 6)

    # --- Required small-shape test: exercises the dense small-C (VPU) path ------------
    N, C, H, W = 2, 4, 16, 16
    x = jax.random.normal(kx, (N, C, H, W), dtype=jnp.float32)
    bound = 1.0 / jnp.sqrt(jnp.float32(C))
    weight = jax.random.uniform(kw, (C, C), minval=-bound, maxval=bound, dtype=jnp.float32)
    bias = jax.random.uniform(kb, (C,), minval=-bound, maxval=bound, dtype=jnp.float32)

    out = jax.block_until_ready(glu_forward(x, weight, bias))
    ref = glu_reference(x, weight, bias)
    assert out.shape == (N, C, H, W), out.shape
    assert jnp.allclose(out, ref, atol=1e-5, rtol=1e-5), float(jnp.max(jnp.abs(out - ref)))

    # --- Secondary check: exercises the bf16 MXU path ---------------------------------
    N2, C2, H2, W2 = 2, 64, 16, 16
    x2 = jax.random.normal(kx2, (N2, C2, H2, W2), dtype=jnp.float32).astype(jnp.bfloat16)
    bound2 = 1.0 / jnp.sqrt(jnp.float32(C2))
    w2 = jax.random.uniform(kw2, (C2, C2), minval=-bound2, maxval=bound2, dtype=jnp.float32)
    b2 = jax.random.uniform(kb2, (C2,), minval=-bound2, maxval=bound2, dtype=jnp.float32)

    out2 = jax.block_until_ready(glu_forward(x2, w2, b2))
    ref2 = glu_reference(x2.astype(jnp.float32), w2, b2)
    assert out2.shape == (N2, C2, H2, W2), out2.shape
    err2 = jnp.max(jnp.abs(out2.astype(jnp.float32) - ref2))
    assert jnp.allclose(out2.astype(jnp.float32), ref2, atol=2e-2, rtol=5e-2), float(err2)

    print("KERNEL_OK")
</pallas_src>

<mosaic_0001>
module attributes {stable_mosaic.version = 11 : i64} {
  func.func @_glu_kernel_vpu(%arg0: i32, %arg1: i32, %arg2: i32, %arg3: memref<4x4xf32, #tpu.memory_space<vmem>>, %arg4: memref<4x1xf32, #tpu.memory_space<vmem>>, %arg5: memref<1x4x256xf32, #tpu.memory_space<vmem>>, %arg6: memref<1x4x256xf32, #tpu.memory_space<vmem>>) attributes {dimension_semantics = [#tpu.dimension_semantics<parallel>, #tpu.dimension_semantics<parallel>, #tpu.dimension_semantics<parallel>], iteration_bounds = array<i64: 2, 1, 1>, scalar_prefetch = 0 : i64, scratch_operands = 0 : i64, tpu.core_type = #tpu.core_type<tc>, window_params = [{transform_indices = @transform_0, window_bounds = array<i64: 4, 4>}, {transform_indices = @transform_1, window_bounds = array<i64: 4, 1>}, {transform_indices = @transform_2, window_bounds = array<i64: 1, 4, 256>}, {transform_indices = @transform_3, window_bounds = array<i64: 1, 4, 256>}]} {
    %c0 = arith.constant 0 : index
    %c0_0 = arith.constant 0 : index
    %0 = vector.load %arg3[%c0, %c0_0] : memref<4x4xf32, #tpu.memory_space<vmem>>, vector<4x4xf32>
    %c0_1 = arith.constant 0 : index
    %c0_2 = arith.constant 0 : index
    %1 = vector.load %arg4[%c0_1, %c0_2] : memref<4x1xf32, #tpu.memory_space<vmem>>, vector<4x1xf32>
    %c0_3 = arith.constant 0 : index
    %c0_4 = arith.constant 0 : index
    %c0_5 = arith.constant 0 : index
    %2 = vector.load %arg5[%c0_3, %c0_4, %c0_5] : memref<1x4x256xf32, #tpu.memory_space<vmem>>, vector<1x4x256xf32>
    %3 = vector.shape_cast %2 : vector<1x4x256xf32> to vector<4x256xf32>
    %4 = vector.extract_strided_slice %0 {offsets = [0, 0], sizes = [4, 1], strides = [1, 1]} : vector<4x4xf32> to vector<4x1xf32>
    %5 = vector.extract_strided_slice %3 {offsets = [0, 0], sizes = [1, 256], strides = [1, 1]} : vector<4x256xf32> to vector<1x256xf32>
    %6 = vector.broadcast %4 : vector<4x1xf32> to vector<4x256xf32>
    %7 = vector.broadcast %5 : vector<1x256xf32> to vector<4x256xf32>
    %8 = arith.mulf %6, %7 : vector<4x256xf32>
    %9 = vector.broadcast %1 : vector<4x1xf32> to vector<4x256xf32>
    %10 = arith.addf %9, %8 : vector<4x256xf32>
    %11 = vector.extract_strided_slice %0 {offsets = [0, 1], sizes = [4, 1], strides = [1, 1]} : vector<4x4xf32> to vector<4x1xf32>
    %12 = vector.extract_strided_slice %3 {offsets = [1, 0], sizes = [1, 256], strides = [1, 1]} : vector<4x256xf32> to vector<1x256xf32>
    %13 = vector.broadcast %11 : vector<4x1xf32> to vector<4x256xf32>
    %14 = vector.broadcast %12 : vector<1x256xf32> to vector<4x256xf32>
    %15 = arith.mulf %13, %14 : vector<4x256xf32>
    %16 = arith.addf %10, %15 : vector<4x256xf32>
    %17 = vector.extract_strided_slice %0 {offsets = [0, 2], sizes = [4, 1], strides = [1, 1]} : vector<4x4xf32> to vector<4x1xf32>
    %18 = vector.extract_strided_slice %3 {offsets = [2, 0], sizes = [1, 256], strides = [1, 1]} : vector<4x256xf32> to vector<1x256xf32>
    %19 = vector.broadcast %17 : vector<4x1xf32> to vector<4x256xf32>
    %20 = vector.broadcast %18 : vector<1x256xf32> to vector<4x256xf32>
    %21 = arith.mulf %19, %20 : vector<4x256xf32>
    %22 = arith.addf %16, %21 : vector<4x256xf32>
    %23 = vector.extract_strided_slice %0 {offsets = [0, 3], sizes = [4, 1], strides = [1, 1]} : vector<4x4xf32> to vector<4x1xf32>
    %24 = vector.extract_strided_slice %3 {offsets = [3, 0], sizes = [1, 256], strides = [1, 1]} : vector<4x256xf32> to vector<1x256xf32>
    %25 = vector.broadcast %23 : vector<4x1xf32> to vector<4x256xf32>
    %26 = vector.broadcast %24 : vector<1x256xf32> to vector<4x256xf32>
    %27 = arith.mulf %25, %26 : vector<4x256xf32>
    %28 = arith.addf %22, %27 : vector<4x256xf32>
    %cst = arith.constant 0.000000e+00 : f32
    %29 = vector.broadcast %cst : f32 to vector<4x256xf32>
    %30 = arith.subf %29, %28 : vector<4x256xf32>
    %31 = math.exp %30 : vector<4x256xf32>
    %cst_6 = arith.constant 1.000000e+00 : f32
    %32 = vector.broadcast %cst_6 : f32 to vector<4x256xf32>
    %33 = arith.addf %32, %31 : vector<4x256xf32>
    %34 = tpu.reciprocal %33 : vector<4x256xf32> -> vector<4x256xf32>
    %35 = arith.mulf %28, %34 : vector<4x256xf32>
    %c0_7 = arith.constant 0 : index
    %c0_8 = arith.constant 0 : index
    %c0_9 = arith.constant 0 : index
    %36 = vector.load %arg6[%c0_7, %c0_8, %c0_9] : memref<1x4x256xf32, #tpu.memory_space<vmem>>, vector<1x4x256xf32>
    %37 = vector.shape_cast %36 : vector<1x4x256xf32> to vector<4x256xf32>
    %38 = vector.shape_cast %35 : vector<4x256xf32> to vector<1x4x256xf32>
    tpu.vector_store %arg6[%c0_7, %c0_8, %c0_9], %38 {strides = array<i32>} : memref<1x4x256xf32, #tpu.memory_space<vmem>>, vector<1x4x256xf32>,
    return
  }
  func.func @transform_0(%arg0: i32, %arg1: i32, %arg2: i32) -> (i32, i32) {
    %c0_i32 = arith.constant 0 : i32
    %c0_i32_0 = arith.constant 0 : i32
    return %arg2, %c0_i32 : i32, i32
  }
  func.func @transform_1(%arg0: i32, %arg1: i32, %arg2: i32) -> (i32, i32) {
    %c0_i32 = arith.constant 0 : i32
    %c0_i32_0 = arith.constant 0 : i32
    return %arg2, %c0_i32 : i32, i32
  }
  func.func @transform_2(%arg0: i32, %arg1: i32, %arg2: i32) -> (i32, i32, i32) {
    %c0_i32 = arith.constant 0 : i32
    %c0_i32_0 = arith.constant 0 : i32
    return %arg0, %c0_i32, %arg1 : i32, i32, i32
  }
  func.func @transform_3(%arg0: i32, %arg1: i32, %arg2: i32) -> (i32, i32, i32) {
    %c0_i32 = arith.constant 0 : i32
    return %arg0, %arg2, %arg1 : i32, i32, i32
  }
}

</mosaic_0001>

<bundles_post_ra>
// kernel: tpu_custom_call.1
= control target key start
LH: loop header
LB: loop body
LE: loop exit
PB: predicated region body
PF: predicated region fallthrough
CT: control target
= control target key end

     0   :  { %8 = vsyncpa [#allocation3], 0  ;;  %s896_s0 = inlined_call_operand.vmem [shape: f32[4,4], index: 0, kind: input, shape index: {}]   ;;  %s897_s1 = inlined_call_operand.vmem [shape: f32[4,1], index: 1, kind: input, shape index: {}]   ;;  %s898_s2 = inlined_call_operand.hbm [shape: f32[2,4,256], index: 2, kind: input, shape index: {}]   ;;  %s899_s3 = inlined_call_operand.hbm [shape: f32[2,4,256], index: 3, kind: output, shape index: {}]  }
   0x1   :  { %10 = vsyncpa [#allocation3 + $0x1], 0 }
   0x2   :  { %11 = vsyncpa [#allocation4], 0 }
   0x3   :  { %13 = vsyncpa [#allocation4 + $0x1], 0  ;;  %s752_s12 = smov 0   ;;  %s754_s13 = smov 0  }
   0x4   :  { %s756_s14 = smov 0   ;;  %s758_s15 = smov 0  }
   0x5   :  { %s760_s16 = smov 0   ;;  %s762_s17 = smov 0  }
   0x6 LB: > { %s519_s18 = sadd.s32 4294967295, %s724_s17   ;;  %s520_s19 = sadd.s32 4294967294, %s724_s17   ;;  %s724_s17 = sphi %s762_s17, %s19_s17   ;;  %s720_s16 = sphi %s760_s16, %s911_s16   ;;  %s716_s15 = sphi %s758_s15, %s910_s15   ;;  %s712_s14 = sphi %s756_s14, %s909_s14   ;;  %s708_s13 = sphi %s754_s13, %s908_s13   ;;  %s704_s12 = sphi %s752_s12, %s907_s12  }
   0x7   : > { %s38_s20 = sadd.s32 1, %s720_s16  ;;  %s99_s21 = sadd.s32 1, %s712_s14 }
   0x8   : > { %p40_p0 = scmp.ge.s32.totalorder %s38_s20, 2  ;;  %p106_p1 = scmp.ne.s32.totalorder %s712_s14, %s708_s13 }
   0x9   : > { %p107_p2 = scmp.eq.s32.totalorder %s724_s17, 0  ;;  %p112_p3 = scmp.ne.s32.totalorder %s708_s13, %s704_s12 }
   0xa   : > { %s913_s20 = smov (%p40_p0, %s38_s20), 0  ;;  %p113_p5 = scmp.eq.s32.totalorder %s519_s18, 0 }
   0xb   : > { %p793_p4 = por %p107_p2, %p106_p1  ;;  %s94_s23 = ssub.s32 %s720_s16, %s913_s20 }
   0xc   : > { %p140_p6 = scmp.eq.s32.totalorder %s519_s18, 1  ;;  %p97_p7 = scmp.eq.s32.totalorder %s94_s23, 0 }
   0xd   : > { %p799_p8 = por %p113_p5, %p112_p3  ;;  %p146_p10 = scmp.eq.s32.totalorder %s520_s19, 1 }
   0xe   : > { %p803_p9 = por %p140_p6, %p106_p1  ;;  %p550_p13 = scmp.lt.s32.totalorder %s724_s17, 2 }
   0xf   : > { %s808_s26 = scalar_select %p97_p7, %s712_s14, %s99_s21  }
  0x10   : > { %p810_p11 = por %p146_p10, %p112_p3  ;;  %s180_s28 = sand.u32 1, %s712_s14  }
  0x11   : > { %s525_s29 = sshll.u32 %s180_s28, 3  ;;  %s536_s30 = sshll.u32 %s720_s16, 7 }
  0x12   : > { %s903_s27 = scalar_select %p810_p11, 1, 0 }
  0x13   : > { %s192_s6 = scalar_lea.hbm %s898_s2, %s536_s30  ;;  %s184_s7 = scalar_lea.vmem [#allocation2], %s525_s29 }
  0x14   : > { %s194_s8 = sshll.u32 %s184_s7, 4  ;;  %p823_p0 = pnand %p550_p13, %p793_p4  ;;  %s195_s8 = int_to_ptr.vmem [resolvable:$true] %s194_s8 }
  0x15   : > { %p528_p1 = scmp.ge.s32.totalorder %s724_s17, 1  ;;  %p199_p2 = scmp.lt.s32.totalorder %s724_s17, 3 }
  0x16   : > { %s181_s10 = scalar_lea.sflag [#allocation3], %s180_s28  ;;  %p618_p3 = pneg %p823_p0 }
  0x17   : > { %s629_s11 = scalar_lea.vmem %s195_s8, 128  ;;  %s726_s18 = smov [#allocation2]  }
  0x18   : > { %p630_p5 = scmp.ne.s32.totalorder %s195_s8, %s629_s11  ;;  %s634_s19 = sshll.u32 %s726_s18, 4  ;;  %s635_s19 = int_to_ptr.vmem [resolvable:$false] %s634_s19 }
  0x19   : > { %s636_s21 = scalar_lea.vmem %s635_s19, 256  ;;  %p637_p10 = scmp.lt.s32.totalorder %s195_s8, %s635_s19 }
  0x1a   : > { %p632_p6 = pnand %p630_p5, %p618_p3  ;;  %p638_p12 = scmp.lt.s32.totalorder %s636_s21, %s629_s11 }
  0x1c   : > { %p633_p7 = pneg %p632_p6  ;;  %p639_p4 = por %p638_p12, %p637_p10 }
  0x1e   : > { %p640_p13 = pnand %p639_p4, %p633_p7 }
  0x20   : > { %643 = shalt.err (!%p640_p13)
}
  0x21   : > { %545 = dma.hbm_to_vmem [thread:$0]  (!%p823_p0), %s192_s6, 128, %s195_s8, %s181_s10  }
  0x22   : > { %p200_p11 = pnand %p528_p1, %p199_p2 }
  0x23   : > { %s838_s22 = sand.u32 (!%p200_p11), 1, %s708_s13  }
  0x24   : > { %203 = sbr.rel (%p200_p11) target bundleno = 233 (0xe9), region = 32  ;;  %s529_s23 = sshll.u32 (!%p200_p11), %s838_s22, 3 }
  0x25   : > { %s206_s28 = scalar_lea.sflag (!%p200_p11), [#allocation3], %s838_s22  ;;  %s209_s29 = scalar_lea.vmem (!%p200_p11), [#allocation2], %s529_s23 }
  0x29   : > { %695 = dma.done.wait (%p799_p8), %s206_s28, 128  }
  0x2a   : > { %697 = vsyncadd (%p799_p8), %s206_s28, 4294967168  ;;  %v727_v0 = vmov 0   ;;  %v728_v1 = vmov 1   ;;  %v250_v2 = vld [vmem:[%s896_s0] sm:$0xf]  ;;  %v729_v4 = vmov 2   ;;  %v259_v6 = vlaneseq }
  0x2b   : > { %604 = vset.pattern.permute.xlu0 %v727_v0  ;;  %605 = vset.pattern.permute.xlu1 %v728_v1  ;;  %v251_v3 = vld [vmem:[%s897_s1] sm:$0xf]  ;;  %v730_v5 = vmov 3   ;;  %s537_s24 = sshll.u32 %s716_s15, 7  ;;  %s239_s7 = scalar_lea.vmem [#allocation5], %s529_s23 }
  0x2c   : > { %255 = vperm.xlu0 %604, %v250_v2   ;;  %287 = vperm.xlu1 %605, %v250_v2   ;;  %v260_v7 = vshrl.u32 %v259_v6, 7  ;;  %v252_v10 = vld [vmem:[%s209_s29] sm:$0xff]  ;;  %s400_s8 = sshll.u32 %s239_s7, 4  ;;  %s398_s11 = scalar_lea.hbm %s899_s3, %s537_s24  ;;  %s401_s8 = int_to_ptr.vmem [resolvable:$true] %s400_s8 }
  0x2d   : > { %s382_s18 = scalar_lea.sflag [#allocation4], %s838_s22  ;;  %s644_s19 = scalar_lea.vmem %s401_s8, 128 }
  0x2e   : > { %v261_v8 = vsub.s32 0, %v260_v7  ;;  %v265_v9 = vsub.s32 4, %v260_v7  ;;  %v292_v11 = vsub.s32 1, %v260_v7  ;;  %v296_v12 = vsub.s32 5, %v260_v7  ;;  %p645_p8 = scmp.ne.s32.totalorder %s401_s8, %s644_s19  ;;  %s731_s21 = smov [#allocation5]  }
  0x2f   : > { %v318_v13 = vsub.s32 2, %v260_v7  ;;  %v322_v14 = vsub.s32 6, %v260_v7  ;;  %v344_v21 = vsub.s32 3, %v260_v7  ;;  %v348_v22 = vsub.s32 7, %v260_v7  ;;  %s648_s28 = sshll.u32 %s731_s21, 4  ;;  %s649_s28 = int_to_ptr.vmem [resolvable:$false] %s648_s28 }
  0x30   : > { %281 = vperm.xlu0 %604, %v251_v3   ;;  %606 = vset.pattern.permute.xlu1 %v729_v4  ;;  %v262_v15 = vrot.slane %v252_v10, %v261_v8  ;;  %v266_v16 = vrot.slane %v252_v10, %v265_v9  ;;  %v293_v17 = vrot.slane %v252_v10, %v292_v11  ;;  %p646_p11 = pnand %p645_p8, %p803_p9  ;;  %s650_s15 = scalar_lea.vmem %s649_s28, 256 }
  0x31   : > { %313 = vperm.xlu1 %606, %v250_v2   ;;  %v297_v18 = vrot.slane %v252_v10, %v296_v12  ;;  %v319_v19 = vrot.slane %v252_v10, %v318_v13  ;;  %v323_v20 = vrot.slane %v252_v10, %v322_v14  ;;  %v345_v31 = vrot.slane %v252_v10, %v344_v21  ;;  %p651_p0 = scmp.lt.s32.totalorder %s401_s8, %s649_s28  ;;  %p652_p1 = scmp.lt.s32.totalorder %s650_s15, %s644_s19 }
  0x32   : > { %v272_v23 = vrot.slane %v262_v15, %v261_v8  ;;  %v276_v24 = vrot.slane %v266_v16, %v261_v8  ;;  %v303_v27 = vrot.slane %v293_v17, %v292_v11  ;;  %v349_v32 = vrot.slane %v252_v10, %v348_v22  ;;  %p647_p12 = pneg %p646_p11 }
  0x33   : > { %v307_v28 = vrot.slane %v297_v18, %v292_v11  ;;  %v329_v29 = vrot.slane %v319_v19, %v318_v13  ;;  %v333_v30 = vrot.slane %v323_v20, %v318_v13  ;;  %v355_v43 = vrot.slane %v345_v31, %v344_v21  ;;  %p653_p2 = por %p652_p1, %p651_p0 }
  0x34   : > { %607 = vset.pattern.permute.xlu0 %v730_v5  ;;  %v359_v44 = vrot.slane %v349_v32, %v344_v21 }
  0x35   : > { %339 = vperm.xlu0 %607, %v250_v2   ;;  %p654_p3 = pnand %p653_p2, %p647_p12 }
  0xa7   : > { %v256_v25 = vpop.permute.xlu0 %255  ;;  %v288_v26 = vpop.permute.xlu1 %287 }
  0xa8   : > { %v277_v33 = vmul.f32 %v272_v23, %v256_v25  ;;  %v278_v34 = vmul.f32 %v276_v24, %v256_v25  ;;  %v308_v36 = vmul.f32 %v303_v27, %v288_v26  ;;  %v309_v37 = vmul.f32 %v307_v28, %v288_v26 }
  0xab   : > { %v282_v35 = vpop.permute.xlu0 %281 }
  0xac   : > { %v284_v38 = vadd.f32 %v282_v35, %v277_v33  ;;  %v285_v39 = vadd.f32 %v282_v35, %v278_v34  ;;  %v314_v40 = vpop.permute.xlu1 %313 }
  0xad   : > { %v334_v41 = vmul.f32 %v329_v29, %v314_v40  ;;  %v335_v42 = vmul.f32 %v333_v30, %v314_v40 }
  0xae   : > { %v310_v45 = vadd.f32 %v308_v36, %v284_v38  ;;  %v311_v46 = vadd.f32 %v309_v37, %v285_v39 }
  0xb0   : > { %v336_v47 = vadd.f32 %v334_v41, %v310_v45  ;;  %v337_v48 = vadd.f32 %v335_v42, %v311_v46  ;;  %v340_v49 = vpop.permute.xlu0 %339 }
  0xb1   : > { %v360_v50 = vmul.f32 %v355_v43, %v340_v49  ;;  %v361_v51 = vmul.f32 %v359_v44, %v340_v49 }
  0xb3   : > { %v362_v52 = vadd.f32 %v360_v50, %v336_v47  ;;  %v363_v53 = vadd.f32 %v361_v51, %v337_v48 }
  0xb5   : > { %v364_v54 = vsub.f32 0.0, %v362_v52  ;;  %v365_v55 = vsub.f32 0.0, %v363_v53 }
  0xb7   : > { %v366_v56 = vmul.f32 1.442695, %v364_v54  ;;  %v368_v57 = vmul.f32 1.442695, %v365_v55 }
  0xb9   : > { %608 = vpow2.f32 %v366_v56 }
  0xba   : > { %610 = vpow2.f32 %v368_v57 }
  0xc6   : > { %v609_v58 = vpop.eup %608 }
  0xc7   : > { %v611_v59 = vpop.eup %610  ;;  %v370_v60 = vadd.f32 1.0, %v609_v58 }
  0xc8   : > { %v371_v61 = vadd.f32 1.0, %v611_v59 }
  0xc9   : > { %612 = vrcp.f32 %v370_v60 }
  0xca   : > { %614 = vrcp.f32 %v371_v61 }
  0xd6   : > { %v613_v62 = vpop.eup %612 }
  0xd7   : > { %v615_v63 = vpop.eup %614  ;;  %v374_v0 = vmul.f32 %v613_v62, %v362_v52 }
  0xd8   : > { %v375_v1 = vmul.f32 %v615_v63, %v363_v53 }
  0xda   : > { %v378_v2 = vcombine.low %v374_v0, %v375_v1 }
  0xdc   : > { %380 = vst [vmem:[%s239_s7] sm:$0xff] %v378_v2 }
  0xdd   : > { %657 = shalt.err (!%p654_p3)
}
  0xde   : > { %s658_s23 = scalar_lea.hbm %s398_s11, 128  ;;  %s662_s30 = scalar_lea.hbm %s899_s3, 256 }
  0xdf   : > { %p659_p5 = scmp.ne.s32.totalorder %s398_s11, %s658_s23  ;;  %p663_p10 = scmp.lt.s32.totalorder %s398_s11, %s899_s3 }
  0xe0   : > { %p664_p4 = scmp.lt.s32.totalorder %s662_s30, %s658_s23 }
  0xe1   : > { %p660_p6 = pnand %p659_p5, %p803_p9 }
  0xe2   : > { %p665_p13 = por %p664_p4, %p663_p10 }
  0xe3   : > { %p661_p7 = pneg %p660_p6 }
  0xe5   : > { %p666_p8 = pnand %p665_p13, %p661_p7 }
  0xe7   : > { %669 = shalt.err (!%p666_p8)
}
  0xe8   : > { %540 = dma.vmem_to_hbm [thread:$0]  (%p803_p9), %s401_s8, 128, %s398_s11, %s382_s18  }
  0xe9 PF: > { %s412_s6 = sand.u32 1, %s704_s12   ;;  %p905_p11 = scmp.ne.s32.totalorder %s903_s27, 0 }
  0xea   : > { %p906_p12 = scmp.ge.s32.totalorder %s724_s17, 2  ;;  %s413_s24 = scalar_lea.sflag [#allocation4], %s412_s6 }
  0xec   : > { %p547_p0 = pnand %p906_p12, %p905_p11 }
  0xee   : > { %p548_p1 = pneg %p547_p0 }
  0xf0   : > { %699 = dma.done.wait (%p548_p1), %s413_s24, 128  }
  0xf1   : > { %701 = vsyncadd (%p548_p1), %s413_s24, 4294967168  ;;  %s19_s17 = sadd.s32 1, %s724_s17   ;;  %s907_s12 = smov %s708_s13 }
  0xf2   : > { %p16_p2 = scmp.ge.s32.totalorder %s19_s17, 4   ;;  %s908_s13 = smov %s712_s14 }
  0xf3   : > { %s909_s14 = smov %s808_s26  ;;  %s910_s15 = smov %s720_s16 }
  0xf4   : > { %s911_s16 = smov %s913_s20  ;;  %18 = sbr.rel (!%p16_p2) target bundleno = 6 (0x6), region = 83 }
  0xf9   :  { %418 = vsyncpa [#allocation3], 1 }
  0xfa   :  { %420 = vsyncpa [#allocation3 + $0x1], 1 }
  0xfb   :  { %421 = vsyncpa [#allocation4], 1 }
  0xfc   :  { %423 = vsyncpa [#allocation4 + $0x1], 1 }

</bundles_post_ra>
